<compile_context>
chip_gen: v6e
topology: v6e:2x2x1
jax: 0.10.0
libtpu: 0.0.40
codegen_flags: <defaults>
</compile_context>

<pallas_src>
import jax
import jax.numpy as jnp
import numpy as np
from jax.experimental import pallas as pl
from jax.experimental.pallas import tpu as pltpu


# ----------------------------------------------------------------------------
# Host-side weight construction (reference "asymmetric" transform).
# ----------------------------------------------------------------------------
def _interp_matrix(target_size: int, src_size: int) -> np.ndarray:
    """Rows: output coords; cols: weights over source coords (rows sum to 1)."""
    idx = np.arange(target_size, dtype=np.float64)
    scale = target_size / src_size              # reference: src = dst / (target/src)
    src = idx / scale
    i0 = np.floor(src).astype(np.int64)         # int() on non-negative == floor
    i1 = np.minimum(i0 + 1, src_size - 1)
    d = src - i0
    w = np.zeros((target_size, src_size), dtype=np.float64)
    np.add.at(w, (np.arange(target_size), i0), 1.0 - d)
    np.add.at(w, (np.arange(target_size), i1), d)
    return w


def _combined_weight(th: int, tw: int, hi: int, wi: int, dtype) -> jax.Array:
    """W_comb (Hi*Wi, Th*Tw): out_flat = x_flat @ W_comb implements the
    separable bilinear resize in a single matmul."""
    wh = _interp_matrix(th, hi)                 # (Th, Hi)
    ww = _interp_matrix(tw, wi)                 # (Tw, Wi)
    w = np.kron(wh, ww).T                       # (Hi*Wi, Th*Tw)
    return jnp.asarray(w, dtype=dtype)


# ----------------------------------------------------------------------------
# Generation-aware sizing.
# ----------------------------------------------------------------------------
def _tpu_props():
    """(is_megacore, physical_vmem_bytes) with safe fallbacks."""
    try:
        kind = jax.devices()[0].device_kind.lower()
    except Exception:  # pragma: no cover
        kind = ""
    is_megacore = any(t in kind for t in ("v7", "v4", "v5p"))
    try:
        vmem_phys = int(pltpu.get_tpu_info().vmem_capacity_bytes)
    except Exception:  # pragma: no cover
        vmem_phys = (64 << 20) if is_megacore else (128 << 20)
    return is_megacore, vmem_phys


def _pick_batch(nc: int, per_img_bytes: int, budget_bytes: int,
                want_even_steps: bool) -> int:
    """Largest per-step batch B (divisor of nc, B % 8 == 0 or B == nc) whose
    double-buffered working set fits the budget.  On megacore chips prefer an
    even number of grid steps >= 2 so both TensorCores get equal work."""
    candidates = [b for b in range(1, nc + 1)
                  if nc % b == 0 and (b == nc or b % 8 == 0)]
    fits = [b for b in candidates if 2 * b * per_img_bytes <= budget_bytes]
    if not fits:
        fits = [min(candidates)]                # too big even at minimum; raise vmem limit
    if want_even_steps:
        even = [b for b in fits if (nc // b) >= 2 and (nc // b) % 2 == 0]
        if even:
            return max(even)
    return max(fits)


# ----------------------------------------------------------------------------
# Kernel: one lane-dense matmul per grid step.
# ----------------------------------------------------------------------------
def _resize_kernel(w_ref, x_ref, o_ref):
    # w_ref: (Hi*Wi, Th*Tw)  bf16, grid-invariant (resident in VMEM)
    # x_ref: (B, Hi*Wi)      input dtype (cast to bf16 for the MXU)
    # o_ref: (B, Th*Tw)      output dtype
    x = x_ref[...].astype(w_ref.dtype)
    o_ref[...] = jnp.dot(x, w_ref[...],
                         preferred_element_type=jnp.float32).astype(o_ref.dtype)


# ----------------------------------------------------------------------------
# Wrapper.
# ----------------------------------------------------------------------------
def bilinear_resize_pallas(x: jax.Array, target_height: int, target_width: int,
                           *, operand_dtype=jnp.bfloat16) -> jax.Array:
    """x: (N, C, Hi, Wi) -> (N, C, target_height, target_width)."""
    n, c, hi, wi = x.shape
    th, tw = target_height, target_width
    nc = n * c
    k = hi * wi          # contraction dim (256 for the module's shapes)
    m = th * tw          # output lane dim (768 for the module's shapes)

    w_comb = _combined_weight(th, tw, hi, wi, operand_dtype)      # (K, M)

    is_megacore, vmem_phys = _tpu_props()
    itemsize = jnp.dtype(x.dtype).itemsize
    per_img_bytes = k * itemsize + m * itemsize                   # in block + out block
    budget = max(4 << 20, vmem_phys // 4)
    b = _pick_batch(nc, per_img_bytes, budget, want_even_steps=is_megacore)
    grid = (nc // b,)

    weight_bytes = k * m * jnp.dtype(operand_dtype).itemsize
    needed = 2 * weight_bytes + 4 * b * per_img_bytes + (2 << 20)  # 2x buffering + margin
    vmem_limit = int(min(vmem_phys, 100 << 20, max(needed, 16 << 20)))

    x2d = x.reshape(nc, k)                                        # free HBM reshape

    flops = 2 * nc * k * m
    bytes_accessed = nc * k * itemsize + weight_bytes + nc * m * itemsize

    out = pl.pallas_call(
        _resize_kernel,
        out_shape=jax.ShapeDtypeStruct((nc, m), x.dtype),
        grid_spec=pl.GridSpec(
            grid=grid,
            in_specs=[
                pl.BlockSpec((k, m), lambda i: (0, 0)),           # W_comb (resident)
                pl.BlockSpec((b, k), lambda i: (i, 0)),           # B images per step
            ],
            out_specs=pl.BlockSpec((b, m), lambda i: (i, 0)),     # lane-dense output slab
        ),
        compiler_params=pltpu.CompilerParams(
            dimension_semantics=("parallel",),
            vmem_limit_bytes=vmem_limit,
        ),
        cost_estimate=pl.CostEstimate(flops=flops, transcendentals=0,
                                      bytes_accessed=bytes_accessed),
    )(w_comb, x2d)

    return out.reshape(n, c, th, tw)


# ----------------------------------------------------------------------------
# Verification helper: direct port of the PyTorch module's per-pixel loop.
# ----------------------------------------------------------------------------
def _reference_numpy(x: np.ndarray, th: int, tw: int) -> np.ndarray:
    n, c, hi, wi = x.shape
    out = np.zeros((n, c, th, tw), dtype=x.dtype)
    for b in range(n):
        for ch in range(c):
            img = x[b, ch]
            for y in range(th):
                for xx in range(tw):
                    src_x = xx / (tw / wi)
                    src_y = y / (th / hi)
                    x0 = int(src_x)
                    y0 = int(src_y)
                    x1 = min(x0 + 1, wi - 1)
                    y1 = min(y0 + 1, hi - 1)
                    dx = src_x - x0
                    dy = src_y - y0
                    top = img[y0, x0] * (1 - dx) + img[y0, x1] * dx
                    bot = img[y1, x0] * (1 - dx) + img[y1, x1] * dx
                    out[b, ch, y, xx] = top * (1 - dy) + bot * dy
    return out


if __name__ == "__main__":
    key = jax.random.PRNGKey(0)
    N, C, HI, WI = 2, 4, 16, 16
    TARGET_H, TARGET_W = 32, 24

    x = jax.random.normal(key, (N, C, HI, WI), dtype=jnp.float32)

    y = bilinear_resize_pallas(x, TARGET_H, TARGET_W)
    y = jax.block_until_ready(y)

    y_ref = _reference_numpy(np.asarray(x), TARGET_H, TARGET_W)
    # bf16 MXU operands (f32 accumulation): relaxed tolerance per perf review.
    np.testing.assert_allclose(np.asarray(y), y_ref, rtol=2e-2, atol=2e-2)

    print("KERNEL_OK")
</pallas_src>

<mosaic_0001>
module attributes {stable_mosaic.version = 11 : i64} {
  func.func @_resize_kernel(%arg0: i32, %arg1: memref<256x768xbf16, #tpu.memory_space<vmem>>, %arg2: memref<8x256xf32, #tpu.memory_space<vmem>>, %arg3: memref<8x768xf32, #tpu.memory_space<vmem>>) attributes {dimension_semantics = [#tpu.dimension_semantics<parallel>], iteration_bounds = array<i64: 1>, scalar_prefetch = 0 : i64, scratch_operands = 0 : i64, tpu.core_type = #tpu.core_type<tc>, window_params = [{pipeline_mode = #tpu.pipeline_mode<synchronous>, transform_indices = @transform_0, window_bounds = array<i64: 256, 768>}, {transform_indices = @transform_1, window_bounds = array<i64: 8, 256>}, {transform_indices = @transform_2, window_bounds = array<i64: 8, 768>}]} {
    %c0 = arith.constant 0 : index
    %c0_0 = arith.constant 0 : index
    %0 = vector.load %arg2[%c0, %c0_0] : memref<8x256xf32, #tpu.memory_space<vmem>>, vector<8x256xf32>
    %1 = arith.truncf %0 : vector<8x256xf32> to vector<8x256xbf16>
    %c0_1 = arith.constant 0 : index
    %c0_2 = arith.constant 0 : index
    %2 = vector.load %arg1[%c0_1, %c0_2] : memref<256x768xbf16, #tpu.memory_space<vmem>>, vector<256x768xbf16>
    %cst = arith.constant dense<0.000000e+00> : vector<8x768xf32>
    %3 = tpu.matmul %1, %2, %cst {dimension_numbers = #tpu.dot_dimension_numbers<[1], [0], [0], [1], [0, 0, 1, 1], [], []>} : vector<8x256xbf16>, vector<256x768xbf16>, vector<8x768xf32> -> vector<8x768xf32>
    %c0_3 = arith.constant 0 : index
    %c0_4 = arith.constant 0 : index
    %4 = vector.load %arg3[%c0_3, %c0_4] : memref<8x768xf32, #tpu.memory_space<vmem>>, vector<8x768xf32>
    tpu.vector_store %arg3[%c0_3, %c0_4], %3 {strides = array<i32>} : memref<8x768xf32, #tpu.memory_space<vmem>>, vector<8x768xf32>,
    return
  }
  func.func @transform_0(%arg0: i32) -> (i32, i32) {
    %c0_i32 = arith.constant 0 : i32
    %c0_i32_0 = arith.constant 0 : i32
    %c0_i32_1 = arith.constant 0 : i32
    return %c0_i32, %c0_i32_0 : i32, i32
  }
  func.func @transform_1(%arg0: i32) -> (i32, i32) {
    %c0_i32 = arith.constant 0 : i32
    %c0_i32_0 = arith.constant 0 : i32
    return %arg0, %c0_i32 : i32, i32
  }
  func.func @transform_2(%arg0: i32) -> (i32, i32) {
    %c0_i32 = arith.constant 0 : i32
    %c0_i32_0 = arith.constant 0 : i32
    return %arg0, %c0_i32 : i32, i32
  }
}

</mosaic_0001>

<bundles_post_ra>
// kernel: tpu_custom_call.1
= control target key start
LH: loop header
LB: loop body
LE: loop exit
PB: predicated region body
PF: predicated region fallthrough
CT: control target
= control target key end

     0   :  { %7 = vsyncpa [#allocation3], 0  ;;  %s1113_s0 = inlined_call_operand.hbm [shape: bf16[256,768], index: 0, kind: input, shape index: {}]   ;;  %s1114_s1 = inlined_call_operand.hbm [shape: f32[8,256], index: 1, kind: input, shape index: {}]   ;;  %s1115_s2 = inlined_call_operand.hbm [shape: f32[8,768], index: 2, kind: output, shape index: {}]  }
   0x1   :  { %8 = vsyncpa [#allocation6], 0 }
   0x2   :  { %9 = vsyncpa [#allocation4], 0  ;;  %s1074_s9 = smov [#allocation2]  }
   0x3   :  { %s15_s10 = sshll.u32 %s1074_s9, 4  ;;  %s16_s10 = int_to_ptr.vmem [resolvable:$true] %s15_s10 }
   0x4   :  { %s1016_s11 = scalar_lea.vmem %s16_s10, 12288  ;;  %p1021_p1 = scmp.lt.s32.totalorder %s16_s10, %s16_s10 }
   0x5   :  { %p1017_p0 = scmp.ne.s32.totalorder %s16_s10, %s1016_s11  ;;  %p1022_p2 = scmp.lt.s32.totalorder %s1016_s11, %s1016_s11 }
   0x7   :  { %p1023_p3 = por %p1022_p2, %p1021_p1 }
   0x9   :  { %p1024_p4 = pnand %p1023_p3, %p1017_p0 }
   0xb   :  { %1027 = shalt.err (!%p1024_p4)
}
   0xc   :  { %s1075_s12 = smov 384   ;;  %s1076_s13 = smov 24  }
   0xd   :  { %21 = dma.hbm_to_vmem [thread:$0]  %s1113_s0, 12288, %s16_s10, [#allocation3], %s1075_s12, %s1075_s12, %s1076_s13  }
   0xe   :  { %s1077_s16 = smov [#allocation5]  }
   0xf   :  { %s28_s17 = sshll.u32 %s1077_s16, 4  ;;  %s29_s17 = int_to_ptr.vmem [resolvable:$true] %s28_s17 }
  0x10   :  { %s1036_s18 = scalar_lea.vmem %s29_s17, 256  ;;  %p1041_p6 = scmp.lt.s32.totalorder %s29_s17, %s29_s17 }
  0x11   :  { %p1037_p5 = scmp.ne.s32.totalorder %s29_s17, %s1036_s18  ;;  %p1042_p7 = scmp.lt.s32.totalorder %s1036_s18, %s1036_s18 }
  0x13   :  { %p1043_p8 = por %p1042_p7, %p1041_p6 }
  0x15   :  { %p1044_p9 = pnand %p1043_p8, %p1037_p5 }
  0x17   :  { %1047 = shalt.err (!%p1044_p9)
}
  0x18   :  { %31 = dma.hbm_to_vmem [thread:$0]  %s1114_s1, 256, %s29_s17, [#allocation6]  }
  0x19   :  { %1068 = dma.done.wait [#allocation3], 12288  }
  0x1a   :  { %1069 = vsyncadd [#allocation3], 4294955008 }
  0x1b   :  { %1070 = dma.done.wait [#allocation6], 256  }
  0x1c   :  { %1071 = vsyncadd [#allocation6], 4294967040  ;;  %v864_v0 = vld [vmem:[#allocation2 + $0x154] ss:$24 sps:$4 sm:$0xff]   ;;  %v866_v1 = vld [vmem:[#allocation2 + $0x150] ss:$24 sps:$4 sm:$0xff]  }
  0x1d   :  { %618 = vmatprep.subr.bf16.mxu0 %v864_v0  ;;  %v867_v2 = vld [vmem:[#allocation2 + $0x124] ss:$24 sps:$4 sm:$0xff]   ;;  %v869_v3 = vld [vmem:[#allocation2 + $0x120] ss:$24 sps:$4 sm:$0xff]   ;;  %v870_v4 = vld [vmem:[#allocation2 + $0xf4] ss:$24 sps:$4 sm:$0xff]  }
  0x1e   :  { %619 = vmatpush1.bf16.msra.mxu0 %v866_v1  ;;  %v872_v5 = vld [vmem:[#allocation2 + $0xf0] ss:$24 sps:$4 sm:$0xff]   ;;  %v873_v6 = vld [vmem:[#allocation2 + $0xc4] ss:$24 sps:$4 sm:$0xff]   ;;  %v875_v7 = vld [vmem:[#allocation2 + $0xc0] ss:$24 sps:$4 sm:$0xff]  }
  0x1f   :  { %620 = vmatprep.subr.bf16.mxu0 %v867_v2  ;;  %v876_v8 = vld [vmem:[#allocation2 + $0x94] ss:$24 sps:$4 sm:$0xff]   ;;  %v878_v9 = vld [vmem:[#allocation2 + $0x90] ss:$24 sps:$4 sm:$0xff]   ;;  %v879_v10 = vld [vmem:[#allocation2 + $0x64] ss:$24 sps:$4 sm:$0xff]  }
  0x20   :  { %v881_v11 = vld [vmem:[#allocation2 + $0x60] ss:$24 sps:$4 sm:$0xff]   ;;  %v882_v12 = vld [vmem:[#allocation2 + $0x34] ss:$24 sps:$4 sm:$0xff]   ;;  %v884_v15 = vld [vmem:[#allocation2 + $0x30] ss:$24 sps:$4 sm:$0xff]  }
  0x21   :  { %v909_v13 = vld [vmem:[#allocation2 + $0x15c] ss:$24 sps:$4 sm:$0xff]   ;;  %v911_v14 = vld [vmem:[#allocation2 + $0x158] ss:$24 sps:$4 sm:$0xff]   ;;  %v915_v16 = vld [vmem:[#allocation2 + $0x12c] ss:$24 sps:$4 sm:$0xff]  }
  0x22   :  { %621 = vmatpush1.bf16.msra.mxu0 %v869_v3  ;;  %659 = vmatprep.subr.bf16.mxu1 %v909_v13  ;;  %v39_v17 = vld [vmem:[#allocation5 + $0x8] sm:$0xff]  ;;  %v885_v18 = vld [vmem:[#allocation2 + $0x4] ss:$24 sps:$4 sm:$0xff]   ;;  %v887_v21 = vld [vmem:[#allocation2] ss:$24 sps:$4 sm:$0xff]   ;;  %s1078_s0 = smov [#allocation7]  }
  0x23   :  { %622 = vmatprep.subr.bf16.mxu0 %v870_v4  ;;  %660 = vmatpush1.bf16.msra.mxu1 %v911_v14  ;;  %v1100_v19 = vpack.c.bf16 %v39_v17, %v39_v17  ;;  %v917_v20 = vld [vmem:[#allocation2 + $0x128] ss:$24 sps:$4 sm:$0xff]   ;;  %v921_v22 = vld [vmem:[#allocation2 + $0xfc] ss:$24 sps:$4 sm:$0xff]   ;;  %v923_v23 = vld [vmem:[#allocation2 + $0xf8] ss:$24 sps:$4 sm:$0xff]  }
  0x24   :  { %661 = vmatprep.subr.bf16.mxu1 %v915_v16  ;;  %v888_v24 = vld [vmem:[#allocation2 + $0x2d4] ss:$24 sps:$4 sm:$0xff]   ;;  %v890_v26 = vld [vmem:[#allocation2 + $0x2d0] ss:$24 sps:$4 sm:$0xff]   ;;  %v891_v28 = vld [vmem:[#allocation2 + $0x2a4] ss:$24 sps:$4 sm:$0xff]  }
  0x25   :  { %650 = vmatprep.mubr.bf16.mxu0 %v1100_v19  ;;  %691 = vmatprep.mubr.bf16.mxu1 %v1100_v19  ;;  %v927_v25 = vld [vmem:[#allocation2 + $0xcc] ss:$24 sps:$4 sm:$0xff]   ;;  %v929_v27 = vld [vmem:[#allocation2 + $0xc8] ss:$24 sps:$4 sm:$0xff]   ;;  %v933_v29 = vld [vmem:[#allocation2 + $0x9c] ss:$24 sps:$4 sm:$0xff]  }
  0x26   :  { %623 = vmatpush1.bf16.msra.mxu0 %v872_v5  ;;  %v893_v30 = vld [vmem:[#allocation2 + $0x2a0] ss:$24 sps:$4 sm:$0xff]   ;;  %v894_v32 = vld [vmem:[#allocation2 + $0x274] ss:$24 sps:$4 sm:$0xff]   ;;  %v896_v34 = vld [vmem:[#allocation2 + $0x270] ss:$24 sps:$4 sm:$0xff]  }
  0x27   :  { %624 = vmatprep.subr.bf16.mxu0 %v873_v6  ;;  %662 = vmatpush1.bf16.msra.mxu1 %v917_v20  ;;  %v935_v31 = vld [vmem:[#allocation2 + $0x98] ss:$24 sps:$4 sm:$0xff]   ;;  %v939_v33 = vld [vmem:[#allocation2 + $0x6c] ss:$24 sps:$4 sm:$0xff]   ;;  %v941_v35 = vld [vmem:[#allocation2 + $0x68] ss:$24 sps:$4 sm:$0xff]  }
  0x28   :  { %663 = vmatprep.subr.bf16.mxu1 %v921_v22  ;;  %v897_v36 = vld [vmem:[#allocation2 + $0x244] ss:$24 sps:$4 sm:$0xff]   ;;  %v899_v38 = vld [vmem:[#allocation2 + $0x240] ss:$24 sps:$4 sm:$0xff]   ;;  %v900_v40 = vld [vmem:[#allocation2 + $0x214] ss:$24 sps:$4 sm:$0xff]  }
  0x29   :  { %v945_v37 = vld [vmem:[#allocation2 + $0x3c] ss:$24 sps:$4 sm:$0xff]   ;;  %v947_v39 = vld [vmem:[#allocation2 + $0x38] ss:$24 sps:$4 sm:$0xff]   ;;  %v951_v41 = vld [vmem:[#allocation2 + $0xc] ss:$24 sps:$4 sm:$0xff]  }
  0x2a   :  { %625 = vmatpush1.bf16.msra.mxu0 %v875_v7  ;;  %v902_v42 = vld [vmem:[#allocation2 + $0x210] ss:$24 sps:$4 sm:$0xff]   ;;  %v903_v44 = vld [vmem:[#allocation2 + $0x1e4] ss:$24 sps:$4 sm:$0xff]   ;;  %v905_v46 = vld [vmem:[#allocation2 + $0x1e0] ss:$24 sps:$4 sm:$0xff]  }
  0x2b   :  { %626 = vmatprep.subr.bf16.mxu0 %v876_v8  ;;  %664 = vmatpush1.bf16.msra.mxu1 %v923_v23  ;;  %v953_v43 = vld [vmem:[#allocation2 + $0x8] ss:$24 sps:$4 sm:$0xff]   ;;  %v957_v45 = vld [vmem:[#allocation2 + $0x2dc] ss:$24 sps:$4 sm:$0xff]   ;;  %v959_v47 = vld [vmem:[#allocation2 + $0x2d8] ss:$24 sps:$4 sm:$0xff]  }
  0x2c   :  { %665 = vmatprep.subr.bf16.mxu1 %v927_v25  ;;  %v906_v48 = vld [vmem:[#allocation2 + $0x1b4] ss:$24 sps:$4 sm:$0xff]   ;;  %v908_v50 = vld [vmem:[#allocation2 + $0x1b0] ss:$24 sps:$4 sm:$0xff]   ;;  %v912_v52 = vld [vmem:[#allocation2 + $0x184] ss:$24 sps:$4 sm:$0xff]  }
  0x2d   :  { %v963_v49 = vld [vmem:[#allocation2 + $0x2ac] ss:$24 sps:$4 sm:$0xff]   ;;  %v965_v51 = vld [vmem:[#allocation2 + $0x2a8] ss:$24 sps:$4 sm:$0xff]   ;;  %v969_v53 = vld [vmem:[#allocation2 + $0x27c] ss:$24 sps:$4 sm:$0xff]  }
  0x2e   :  { %627 = vmatpush1.bf16.msra.mxu0 %v878_v9  ;;  %v914_v54 = vld [vmem:[#allocation2 + $0x180] ss:$24 sps:$4 sm:$0xff]   ;;  %v920_v57 = vld [vmem:[#allocation2 + $0x164] ss:$24 sps:$4 sm:$0xff]   ;;  %v926_v62 = vld [vmem:[#allocation2 + $0x134] ss:$24 sps:$4 sm:$0xff]  }
  0x2f   :  { %628 = vmatprep.subr.bf16.mxu0 %v879_v10  ;;  %666 = vmatpush1.bf16.msra.mxu1 %v929_v27  ;;  %v38_v55 = vld [vmem:[#allocation5] sm:$0xff]  ;;  %v971_v56 = vld [vmem:[#allocation2 + $0x278] ss:$24 sps:$4 sm:$0xff]   ;;  %v981_v63 = vld [vmem:[#allocation2 + $0x21c] ss:$24 sps:$4 sm:$0xff]   ;;  %s753_s1 = sshll.u32 %s1078_s0, 4  ;;  %s754_s1 = int_to_ptr.vmem [resolvable:$true] %s753_s1 }
  0x30   :  { %667 = vmatprep.subr.bf16.mxu1 %v933_v29  ;;  %v975_v58 = vld [vmem:[#allocation2 + $0x24c] ss:$24 sps:$4 sm:$0xff]   ;;  %v1104_v59 = vpack.c.bf16 %v38_v55, %v38_v55  ;;  %v918_v60 = vld [vmem:[#allocation2 + $0x160] ss:$24 sps:$4 sm:$0xff]   ;;  %v924_v0 = vld [vmem:[#allocation2 + $0x130] ss:$24 sps:$4 sm:$0xff]   ;;  %p1053_p11 = scmp.lt.s32.totalorder %s754_s1, %s754_s1 }
  0x31   :  { %v977_v61 = vld [vmem:[#allocation2 + $0x248] ss:$24 sps:$4 sm:$0xff]   ;;  %v983_v1 = vld [vmem:[#allocation2 + $0x218] ss:$24 sps:$4 sm:$0xff]   ;;  %v932_v2 = vld [vmem:[#allocation2 + $0x104] ss:$24 sps:$4 sm:$0xff]  }
  0x32   :  { %629 = vmatpush1.bf16.msra.mxu0 %v881_v11  ;;  %v987_v3 = vld [vmem:[#allocation2 + $0x1ec] ss:$24 sps:$4 sm:$0xff]   ;;  %v930_v4 = vld [vmem:[#allocation2 + $0x100] ss:$24 sps:$4 sm:$0xff]   ;;  %v993_v7 = vld [vmem:[#allocation2 + $0x1bc] ss:$24 sps:$4 sm:$0xff]  }
  0x33   :  { %630 = vmatprep.subr.bf16.mxu0 %v882_v12  ;;  %668 = vmatpush1.bf16.msra.mxu1 %v935_v31  ;;  %v989_v5 = vld [vmem:[#allocation2 + $0x1e8] ss:$24 sps:$4 sm:$0xff]   ;;  %v938_v6 = vld [vmem:[#allocation2 + $0xd4] ss:$24 sps:$4 sm:$0xff]   ;;  %v995_v9 = vld [vmem:[#allocation2 + $0x1b8] ss:$24 sps:$4 sm:$0xff]  }
  0x34   :  { %669 = vmatprep.subr.bf16.mxu1 %v939_v33  ;;  %v936_v8 = vld [vmem:[#allocation2 + $0xd0] ss:$24 sps:$4 sm:$0xff]   ;;  %v944_v10 = vld [vmem:[#allocation2 + $0xa4] ss:$24 sps:$4 sm:$0xff]   ;;  %v942_v12 = vld [vmem:[#allocation2 + $0xa0] ss:$24 sps:$4 sm:$0xff]  }
  0x35   :  { %v999_v11 = vld [vmem:[#allocation2 + $0x18c] ss:$24 sps:$4 sm:$0xff]   ;;  %v1001_v13 = vld [vmem:[#allocation2 + $0x188] ss:$24 sps:$4 sm:$0xff]   ;;  %s1048_s21 = scalar_lea.vmem %s754_s1, 768 }
  0x36   :  { %631 = vmatpush1.bf16.msra.mxu0 %v884_v15  ;;  %v950_v14 = vld [vmem:[#allocation2 + $0x74] ss:$24 sps:$4 sm:$0xff]   ;;  %v948_v15 = vld [vmem:[#allocation2 + $0x70] ss:$24 sps:$4 sm:$0xff]   ;;  %v956_v16 = vld [vmem:[#allocation2 + $0x44] ss:$24 sps:$4 sm:$0xff]   ;;  %p1049_p10 = scmp.ne.s32.totalorder %s754_s1, %s1048_s21  ;;  %p1054_p12 = scmp.lt.s32.totalorder %s1048_s21, %s1048_s21 }
  0x37   :  { %632 = vmatprep.subr.bf16.mxu0 %v885_v18  ;;  %670 = vmatpush1.bf16.msra.mxu1 %v941_v35  ;;  %v954_v17 = vld [vmem:[#allocation2 + $0x40] ss:$24 sps:$4 sm:$0xff]   ;;  %v962_v18 = vld [vmem:[#allocation2 + $0x14] ss:$24 sps:$4 sm:$0xff]   ;;  %v968_v20 = vld [vmem:[#allocation2 + $0x2e4] ss:$24 sps:$4 sm:$0xff]  }
  0x38   :  { %671 = vmatprep.subr.bf16.mxu1 %v945_v37  ;;  %v974_v22 = vld [vmem:[#allocation2 + $0x2b4] ss:$24 sps:$4 sm:$0xff]   ;;  %v972_v23 = vld [vmem:[#allocation2 + $0x2b0] ss:$24 sps:$4 sm:$0xff]   ;;  %v978_v25 = vld [vmem:[#allocation2 + $0x280] ss:$24 sps:$4 sm:$0xff]   ;;  %p1055_p13 = por %p1054_p12, %p1053_p11 }
  0x39   :  { %v984_v27 = vld [vmem:[#allocation2 + $0x250] ss:$24 sps:$4 sm:$0xff]   ;;  %v990_v29 = vld [vmem:[#allocation2 + $0x220] ss:$24 sps:$4 sm:$0xff]  }
  0x3a   :  { %633 = vmatpush1.bf16.msra.mxu0 %v887_v21  ;;  %v966_v21 = vld [vmem:[#allocation2 + $0x2e0] ss:$24 sps:$4 sm:$0xff]   ;;  %v996_v31 = vld [vmem:[#allocation2 + $0x1f0] ss:$24 sps:$4 sm:$0xff]   ;;  %p1056_p0 = pnand %p1055_p13, %p1049_p10 }
  0x3b   :  { %634 = vmatprep.subr.bf16.mxu0 %v888_v24  ;;  %672 = vmatpush1.bf16.msra.mxu1 %v947_v39  ;;  %v980_v24 = vld [vmem:[#allocation2 + $0x284] ss:$24 sps:$4 sm:$0xff]   ;;  %v1002_v33 = vld [vmem:[#allocation2 + $0x1c0] ss:$24 sps:$4 sm:$0xff]   ;;  %v1005_v35 = vld [vmem:[#allocation2 + $0x190] ss:$24 sps:$4 sm:$0xff]  }
  0x3c   :  { %673 = vmatprep.subr.bf16.mxu1 %v951_v41 }
  0x3e   :  { %635 = vmatpush2.bf16.msra.mxu0 %v890_v26  ;;  %v986_v26 = vld [vmem:[#allocation2 + $0x254] ss:$24 sps:$4 sm:$0xff]  }
  0x3f   :  { %636 = vmatprep.subr.bf16.mxu0 %v891_v28  ;;  %674 = vmatpush1.bf16.msra.mxu1 %v953_v43  ;;  %v992_v28 = vld [vmem:[#allocation2 + $0x224] ss:$24 sps:$4 sm:$0xff]  }
  0x40   :  { %675 = vmatprep.subr.bf16.mxu1 %v957_v45 }
  0x42   :  { %637 = vmatpush2.bf16.msra.mxu0 %v893_v30  ;;  %v998_v30 = vld [vmem:[#allocation2 + $0x1f4] ss:$24 sps:$4 sm:$0xff]  }
  0x43   :  { %638 = vmatprep.subr.bf16.mxu0 %v894_v32  ;;  %676 = vmatpush2.bf16.msra.mxu1 %v959_v47  ;;  %v1004_v32 = vld [vmem:[#allocation2 + $0x1c4] ss:$24 sps:$4 sm:$0xff]  }
  0x44   :  { %677 = vmatprep.subr.bf16.mxu1 %v963_v49 }
  0x46   :  { %639 = vmatpush2.bf16.msra.mxu0 %v896_v34  ;;  %v1007_v34 = vld [vmem:[#allocation2 + $0x194] ss:$24 sps:$4 sm:$0xff]  }
  0x47   :  { %640 = vmatprep.subr.bf16.mxu0 %v897_v36  ;;  %678 = vmatpush2.bf16.msra.mxu1 %v965_v51 }
  0x48   :  { %679 = vmatprep.subr.bf16.mxu1 %v969_v53 }
  0x4a   :  { %641 = vmatpush2.bf16.msra.mxu0 %v899_v38 }
  0x4b   :  { %642 = vmatprep.subr.bf16.mxu0 %v900_v40  ;;  %680 = vmatpush2.bf16.msra.mxu1 %v971_v56 }
  0x4c   :  { %681 = vmatprep.subr.bf16.mxu1 %v975_v58 }
  0x4e   :  { %643 = vmatpush2.bf16.msra.mxu0 %v902_v42 }
  0x4f   :  { %644 = vmatprep.subr.bf16.mxu0 %v903_v44  ;;  %682 = vmatpush2.bf16.msra.mxu1 %v977_v61 }
  0x50   :  { %683 = vmatprep.subr.bf16.mxu1 %v981_v63 }
  0x52   :  { %645 = vmatpush2.bf16.msra.mxu0 %v905_v46 }
  0x53   :  { %646 = vmatprep.subr.bf16.mxu0 %v906_v48  ;;  %684 = vmatpush2.bf16.msra.mxu1 %v983_v1 }
  0x54   :  { %685 = vmatprep.subr.bf16.mxu1 %v987_v3 }
  0x56   :  { %647 = vmatpush2.bf16.msra.mxu0 %v908_v50 }
  0x57   :  { %648 = vmatprep.subr.bf16.mxu0 %v912_v52  ;;  %686 = vmatpush2.bf16.msra.mxu1 %v989_v5 }
  0x58   :  { %687 = vmatprep.subr.bf16.mxu1 %v993_v7 }
  0x5a   :  { %649 = vmatpush2.bf16.msra.mxu0 %v914_v54 }
  0x5b   :  { %700 = vmatprep.subr.bf16.mxu0 %v920_v57  ;;  %688 = vmatpush2.bf16.msra.mxu1 %v995_v9 }
  0x5c   :  { %689 = vmatprep.subr.bf16.mxu1 %v999_v11 }
  0x5d   :  { %651 = vmatmul.mubr.bf16.vlgmr.msra.gmra.mxu0 %v1104_v59 }
  0x5e   :  { %701 = vmatpush1.bf16.msra.mxu0 %v918_v60  ;;  %732 = vmatprep.mubr.bf16.mxu0 %v1100_v19  ;;  %v960_v19 = vld [vmem:[#allocation2 + $0x10] ss:$24 sps:$4 sm:$0xff]  }
  0x5f   :  { %702 = vmatprep.subr.bf16.mxu0 %v926_v62  ;;  %690 = vmatpush2.bf16.msra.mxu1 %v1001_v13 }
  0x62   :  { %703 = vmatpush1.bf16.msra.mxu0 %v924_v0  ;;  %692 = vmatmul.mubr.bf16.vlgmr.msra.gmra.mxu1 %v1104_v59 }
  0x63   :  { %704 = vmatprep.subr.bf16.mxu0 %v932_v2 }
  0x66   :  { %705 = vmatpush1.bf16.msra.mxu0 %v930_v4 }
  0x67   :  { %706 = vmatprep.subr.bf16.mxu0 %v938_v6 }
  0x6a   :  { %707 = vmatpush1.bf16.msra.mxu0 %v936_v8 }
  0x6b   :  { %708 = vmatprep.subr.bf16.mxu0 %v944_v10 }
  0x6e   :  { %709 = vmatpush1.bf16.msra.mxu0 %v942_v12 }
  0x6f   :  { %710 = vmatprep.subr.bf16.mxu0 %v950_v14 }
  0x72   :  { %711 = vmatpush1.bf16.msra.mxu0 %v948_v15 }
  0x73   :  { %712 = vmatprep.subr.bf16.mxu0 %v956_v16 }
  0x76   :  { %713 = vmatpush1.bf16.msra.mxu0 %v954_v17 }
  0x77   :  { %714 = vmatprep.subr.bf16.mxu0 %v962_v18 }
  0x7a   :  { %715 = vmatpush1.bf16.msra.mxu0 %v960_v19 }
  0x7b   :  { %716 = vmatprep.subr.bf16.mxu0 %v968_v20 }
  0x7e   :  { %717 = vmatpush2.bf16.msra.mxu0 %v966_v21 }
  0x7f   :  { %718 = vmatprep.subr.bf16.mxu0 %v974_v22 }
  0x82   :  { %719 = vmatpush2.bf16.msra.mxu0 %v972_v23 }
  0x83   :  { %720 = vmatprep.subr.bf16.mxu0 %v980_v24 }
  0x86   :  { %721 = vmatpush2.bf16.msra.mxu0 %v978_v25 }
  0x87   :  { %722 = vmatprep.subr.bf16.mxu0 %v986_v26 }
  0x8a   :  { %723 = vmatpush2.bf16.msra.mxu0 %v984_v27 }
  0x8b   :  { %724 = vmatprep.subr.bf16.mxu0 %v992_v28 }
  0x8e   :  { %725 = vmatpush2.bf16.msra.mxu0 %v990_v29 }
  0x8f   :  { %726 = vmatprep.subr.bf16.mxu0 %v998_v30 }
  0x92   :  { %727 = vmatpush2.bf16.msra.mxu0 %v996_v31 }
  0x93   :  { %728 = vmatprep.subr.bf16.mxu0 %v1004_v32 }
  0x96   :  { %729 = vmatpush2.bf16.msra.mxu0 %v1002_v33 }
  0x97   :  { %730 = vmatprep.subr.bf16.mxu0 %v1007_v34 }
  0x9a   :  { %731 = vmatpush2.bf16.msra.mxu0 %v1005_v35 }
  0x9d   :  { %733 = vmatmul.mubr.bf16.vlgmr.msra.gmra.mxu0 %v1104_v59 }
 0x11d   :  { %v652_v36 = vpop.f32.mrf.mxu0 }
 0x11e   :  { %741 = vst [vmem:[#allocation7] sm:$0xff] %v652_v36 }
 0x11f   :  { %v654_v37 = vpop.f32.mrf.mxu0 }
 0x120   :  { %742 = vst [vmem:[#allocation7 + $0x8] sm:$0xff] %v654_v37 }
 0x121   :  { %v656_v38 = vpop.f32.mrf.mxu0 }
 0x122   :  { %v693_v40 = vpop.f32.mrf.mxu1 }
 0x123   :  { %v657_v39 = vpop.f32.mrf.mxu0  ;;  %743 = vst [vmem:[#allocation7 + $0x10] sm:$0xff] %v693_v40 }
 0x124   :  { %v695_v41 = vpop.f32.mrf.mxu1 }
 0x125   :  { %744 = vst [vmem:[#allocation7 + $0x18] sm:$0xff] %v695_v41 }
 0x126   :  { %v697_v42 = vpop.f32.mrf.mxu1 }
 0x128   :  { %v698_v43 = vpop.f32.mrf.mxu1 }
 0x15d   :  { %v734_v44 = vpop.f32.mrf.mxu0 }
 0x15e   :  { %745 = vst [vmem:[#allocation7 + $0x20] sm:$0xff] %v734_v44 }
 0x15f   :  { %v736_v45 = vpop.f32.mrf.mxu0 }
 0x160   :  { %746 = vst [vmem:[#allocation7 + $0x28] sm:$0xff] %v736_v45 }
 0x161   :  { %v738_v46 = vpop.f32.mrf.mxu0 }
 0x162   :  { %1059 = shalt.err (!%p1056_p0)
}
 0x163   :  { %756 = dma.vmem_to_hbm [thread:$0]  %s754_s1, 768, %s1115_s2, [#allocation4]   ;;  %v739_v47 = vpop.f32.mrf.mxu0 }
 0x164   :  { %1072 = dma.done.wait [#allocation4], 768  }
 0x165   :  { %1073 = vsyncadd [#allocation4], 4294966528 }
 0x166   :  { %760 = vsyncpa [#allocation3], 1 }
 0x167   :  { %761 = vsyncpa [#allocation6], 1 }
 0x168   :  { %762 = vsyncpa [#allocation4], 1 }

</bundles_post_ra>
